<compile_context>
chip_gen: v6e
topology: v6e:2x2x1
jax: 0.10.0
libtpu: 0.0.40
codegen_flags: <defaults>
</compile_context>

<pallas_src>
import jax
import jax.numpy as jnp
from jax import lax
from jax.experimental import pallas as pl
from jax.experimental.pallas import tpu as pltpu


def _round_up(x, m):
    return ((x + m - 1) // m) * m


def _make_nll_kernel(ti, tj, chunk):
    n_chunks = ti // chunk
    n_slices = chunk // 8

    def kernel(cols_ref, rows_ref, terms_ref, acc_ref):
        # grid = (j_tiles, i_tiles); axis 1 (i) is the reduction over mask rows.
        i = pl.program_id(1)

        @pl.when(i == 0)
        def _():
            acc_ref[...] = jnp.zeros_like(acc_ref)

        # Hoist the sublane broadcast of y[j] once per grid step (JAX does not CSE it).
        y_row = jnp.broadcast_to(rows_ref[0:1, :], (8, tj))          # (8, TJ)

        def chunk_body(c, carry):
            base = pl.multiple_of(c * chunk, chunk)
            # First 8-row slice initializes the vreg-resident partial accumulator.
            y_c = cols_ref[pl.ds(base, 8), 0:1]                      # (8, 1)  y[i]
            r_c = cols_ref[pl.ds(base, 8), 1:2]                      # (8, 1)  exp(risk[i]-max)
            partial = jnp.where(y_c >= y_row, r_c, 0.0)              # (8, TJ) VPU select
            for s in range(1, n_slices):
                off = pl.multiple_of(base + 8 * s, 8)
                y_c = cols_ref[pl.ds(off, 8), 0:1]
                r_c = cols_ref[pl.ds(off, 8), 1:2]
                partial = partial + jnp.where(y_c >= y_row, r_c, 0.0)
            # One VMEM read-modify-write per chunk (keeps the vst slot off the critical path).
            acc_ref[...] += partial
            return carry

        lax.fori_loop(0, n_chunks, chunk_body, 0, unroll=True)

        @pl.when(i == pl.num_programs(1) - 1)
        def _():
            # 8 -> 1 cross-sublane reduce (XLU) + epilogue, once per j tile.
            denom = jnp.sum(acc_ref[...], axis=0, keepdims=True)     # (1, TJ)
            risk_row = rows_ref[1:2, :]
            e_row = rows_ref[2:3, :]
            terms_ref[...] = (risk_row - jnp.log(denom)) * e_row

    return kernel


def negative_log_likelihood(risk_pred, y, e, model_weights, weight_decay=0.0,
                            tile_i=1024, tile_j=2048):
    """risk_pred, y, e: (N, 1) float32. model_weights: dict of parameter arrays."""
    risk = risk_pred.astype(jnp.float32).reshape(-1)
    yv = y.astype(jnp.float32).reshape(-1)
    ev = e.astype(jnp.float32).reshape(-1)
    n = risk.shape[0]

    # Stabilized exp computed ONCE here (not per j-tile inside the kernel):
    #   (risk - M) - log(sum_i exp(risk_i - M) * mask) == risk - log(sum_i exp(risk_i) * mask)
    risk_shift = risk - jnp.max(risk)
    exp_risk = jnp.exp(risk_shift)

    n_128 = _round_up(n, 128)
    tj = min(_round_up(int(tile_j), 128), n_128)   # lane / output axis (cheap to grow)
    ti = min(_round_up(int(tile_i), 128), n_128)   # sublane / reduction axis
    # v7x megacore: keep >= 2 tiles on the "parallel" j axis when the problem is big enough.
    if n_128 >= 512 and n_128 <= tj:
        tj = _round_up((n_128 + 1) // 2, 128)
    chunk = 128                                    # rows per streaming inner iteration

    n_pad_i = _round_up(n, ti)                     # reduction (mask-row) axis padding
    n_pad_j = _round_up(n, tj)                     # output (sample) axis padding

    # Padding:
    #   exp_risk -> 0   : padded rows i contribute 0 to every denominator
    #   y        -> -inf: harmless on either axis (padded-column denoms still include exp(0)=1)
    #   e        -> 0   : padded columns j contribute 0 to the final sums
    neg_inf = jnp.float32(-jnp.inf)
    cols = jnp.stack(
        [jnp.pad(yv, (0, n_pad_i - n), constant_values=neg_inf),
         jnp.pad(exp_risk, (0, n_pad_i - n), constant_values=0.0)],
        axis=1)                                                        # (n_pad_i, 2)
    rows = jnp.stack(
        [jnp.pad(yv, (0, n_pad_j - n), constant_values=neg_inf),
         jnp.pad(risk_shift, (0, n_pad_j - n), constant_values=0.0),
         jnp.pad(ev, (0, n_pad_j - n), constant_values=0.0)],
        axis=0)                                                        # (3, n_pad_j)

    grid = (n_pad_j // tj, n_pad_i // ti)   # (j parallel, i reduction last)

    terms = pl.pallas_call(
        _make_nll_kernel(ti, tj, chunk),
        out_shape=jax.ShapeDtypeStruct((1, n_pad_j), jnp.float32),
        grid_spec=pltpu.PrefetchScalarGridSpec(
            num_scalar_prefetch=0,
            grid=grid,
            in_specs=[
                pl.BlockSpec((ti, 2), lambda j, i: (i, 0)),    # packed columns [y, exp_risk]
                pl.BlockSpec((3, tj), lambda j, i: (0, j)),    # packed rows    [y, risk, e]
            ],
            out_specs=pl.BlockSpec((1, tj), lambda j, i: (0, j)),
            scratch_shapes=[pltpu.VMEM((8, tj), jnp.float32)],  # per-j-tile partial denominators
        ),
        compiler_params=pltpu.CompilerParams(
            dimension_semantics=("parallel", "arbitrary"),
            vmem_limit_bytes=32 * 1024 * 1024,   # explicit budget; usage is ~1-2 MiB
        ),
    )(cols, rows)

    nll = -jnp.sum(terms) / jnp.sum(ev)   # O(N) scalar glue (matches reference, incl. sum(e)==0)

    # Regularization(order=2, weight_decay=0): weight_decay * sum of L2 norms of 'weight' params.
    reg = 0.0
    for name, w in model_weights.items():
        if "weight" in name:
            reg = reg + jnp.linalg.norm(w.reshape(-1), ord=2)
    return nll + weight_decay * reg


def _reference(risk_pred, y, e, model_weights, weight_decay=0.0):
    mask = jnp.where((y.T - y) > 0, 0.0, 1.0)                    # (N, N)
    log_loss = jnp.exp(risk_pred) * mask
    log_loss = jnp.sum(log_loss, axis=0)
    log_loss = jnp.log(log_loss).reshape(-1, 1)
    neg_log_loss = -jnp.sum((risk_pred - log_loss) * e) / jnp.sum(e)
    reg = 0.0
    for name, w in model_weights.items():
        if "weight" in name:
            reg = reg + jnp.linalg.norm(w.reshape(-1), ord=2)
    return neg_log_loss + weight_decay * reg


if __name__ == "__main__":
    key = jax.random.PRNGKey(0)
    k1, k2, k3, k4, k5, k6, k7 = jax.random.split(key, 7)

    # Small case (matches the module's (N, 1) survival-batch convention).
    N, H = 8, 32
    risk_pred = jax.random.normal(k1, (N, 1), dtype=jnp.float32)
    y = jax.random.uniform(k2, (N, 1), dtype=jnp.float32) * 10.0      # survival times
    e = (jax.random.uniform(k3, (N, 1)) < 0.7).astype(jnp.float32)    # event indicators
    e = e.at[0, 0].set(1.0)                                           # ensure sum(e) > 0
    model_weights = {"fc.weight": jax.random.normal(k4, (1, H), dtype=jnp.float32)}

    out = negative_log_likelihood(risk_pred, y, e, model_weights, weight_decay=0.0)
    out = jax.block_until_ready(out)
    ref = _reference(risk_pred, y, e, model_weights, weight_decay=0.0)
    assert jnp.allclose(out, ref, rtol=1e-5, atol=1e-5), (out, ref)

    # Second case: padding on both axes, multiple (j, i) tiles, ties in y, accumulator reset.
    N2 = 300
    risk2 = jax.random.normal(k5, (N2, 1), dtype=jnp.float32)
    y2 = jax.random.uniform(k6, (N2, 1), dtype=jnp.float32) * 10.0
    y2 = y2.at[5, 0].set(y2[3, 0])                                    # tie handling
    e2 = (jax.random.uniform(k7, (N2, 1)) < 0.6).astype(jnp.float32)
    e2 = e2.at[0, 0].set(1.0)

    # Small tiles -> (3, 3) grid: exercises acc reset per j tile and multi-step i reduction.
    out2 = negative_log_likelihood(risk2, y2, e2, model_weights, weight_decay=0.0,
                                   tile_i=128, tile_j=128)
    out2 = jax.block_until_ready(out2)
    ref2 = _reference(risk2, y2, e2, model_weights, weight_decay=0.0)
    assert jnp.allclose(out2, ref2, rtol=1e-5, atol=1e-5), (out2, ref2)

    # Default (large asymmetric) tile path on the same data.
    out3 = negative_log_likelihood(risk2, y2, e2, model_weights, weight_decay=0.0)
    out3 = jax.block_until_ready(out3)
    assert jnp.allclose(out3, ref2, rtol=1e-5, atol=1e-5), (out3, ref2)

    # TODO(synk): for very large N (>~16-32K), replace the O(N^2) masked reduction with an
    # O(N log N) sort + suffix-cumsum reformulation (per review, that beats any tiling).
    print("KERNEL_OK")
</pallas_src>

<mosaic_0001>
module attributes {stable_mosaic.version = 11 : i64} {
  func.func @kernel(%arg0: i32, %arg1: i32, %arg2: memref<128x2xf32, #tpu.memory_space<vmem>>, %arg3: memref<3x128xf32, #tpu.memory_space<vmem>>, %arg4: memref<1x128xf32, #tpu.memory_space<vmem>>, %arg5: memref<8x128xf32, #tpu.memory_space<vmem>>) attributes {dimension_semantics = [#tpu.dimension_semantics<parallel>, #tpu.dimension_semantics<arbitrary>], iteration_bounds = array<i64: 1, 1>, scalar_prefetch = 0 : i64, scratch_operands = 1 : i64, tpu.core_type = #tpu.core_type<tc>, window_params = [{transform_indices = @transform_0, window_bounds = array<i64: 128, 2>}, {transform_indices = @transform_1, window_bounds = array<i64: 3, 128>}, {transform_indices = @transform_2, window_bounds = array<i64: 1, 128>}]} {
    %c0_i32 = arith.constant 0 : i32
    %0 = arith.cmpi eq, %arg1, %c0_i32 : i32
    %1 = arith.extui %0 : i1 to i32
    %c0_i32_0 = arith.constant 0 : i32
    %2 = arith.cmpi ne, %1, %c0_i32_0 : i32
    scf.if %2 {
      %cst_55 = arith.constant 0.000000e+00 : f32
      %219 = vector.broadcast %cst_55 : f32 to vector<8x128xf32>
      %c0_56 = arith.constant 0 : index
      %c0_57 = arith.constant 0 : index
      %220 = vector.load %arg5[%c0_56, %c0_57] : memref<8x128xf32, #tpu.memory_space<vmem>>, vector<8x128xf32>
      tpu.vector_store %arg5[%c0_56, %c0_57], %219 {strides = array<i32>} : memref<8x128xf32, #tpu.memory_space<vmem>>, vector<8x128xf32>,
    } else {
    }
    %c0 = arith.constant 0 : index
    %c0_1 = arith.constant 0 : index
    %3 = vector.load %arg3[%c0, %c0_1] : memref<3x128xf32, #tpu.memory_space<vmem>>, vector<1x128xf32>
    %4 = vector.shape_cast %3 : vector<1x128xf32> to vector<1x128xf32>
    %5 = vector.broadcast %4 : vector<1x128xf32> to vector<8x128xf32>
    %c0_i32_2 = arith.constant 0 : i32
    %c128_i32 = arith.constant 128 : i32
    %6 = arith.muli %c0_i32_2, %c128_i32 : i32
    %7 = tpu.assume_multiple %6, 128 : i32
    %8 = arith.index_cast %7 : i32 to index
    %c0_3 = arith.constant 0 : index
    %9 = vector.load %arg2[%8, %c0_3] : memref<128x2xf32, #tpu.memory_space<vmem>>, vector<8x1xf32>
    %10 = arith.index_cast %7 : i32 to index
    %c1 = arith.constant 1 : index
    %11 = vector.load %arg2[%10, %c1] : memref<128x2xf32, #tpu.memory_space<vmem>>, vector<8x1xf32>
    %12 = vector.broadcast %9 : vector<8x1xf32> to vector<8x128xf32>
    %13 = arith.cmpf oge, %12, %5 : vector<8x128xf32>
    %cst = arith.constant 0.000000e+00 : f32
    %14 = vector.shape_cast %11 : vector<8x1xf32> to vector<8x1xf32>
    %15 = vector.broadcast %14 : vector<8x1xf32> to vector<8x128xf32>
    %16 = vector.broadcast %cst : f32 to vector<8x128xf32>
    %17 = arith.select %13, %15, %16 : vector<8x128xi1>, vector<8x128xf32>
    %c8_i32 = arith.constant 8 : i32
    %18 = arith.addi %7, %c8_i32 : i32
    %19 = tpu.assume_multiple %18, 8 : i32
    %20 = arith.index_cast %19 : i32 to index
    %c0_4 = arith.constant 0 : index
    %21 = vector.load %arg2[%20, %c0_4] : memref<128x2xf32, #tpu.memory_space<vmem>>, vector<8x1xf32>
    %22 = arith.index_cast %19 : i32 to index
    %c1_5 = arith.constant 1 : index
    %23 = vector.load %arg2[%22, %c1_5] : memref<128x2xf32, #tpu.memory_space<vmem>>, vector<8x1xf32>
    %24 = vector.broadcast %21 : vector<8x1xf32> to vector<8x128xf32>
    %25 = arith.cmpf oge, %24, %5 : vector<8x128xf32>
    %cst_6 = arith.constant 0.000000e+00 : f32
    %26 = vector.shape_cast %23 : vector<8x1xf32> to vector<8x1xf32>
    %27 = vector.broadcast %26 : vector<8x1xf32> to vector<8x128xf32>
    %28 = vector.broadcast %cst_6 : f32 to vector<8x128xf32>
    %29 = arith.select %25, %27, %28 : vector<8x128xi1>, vector<8x128xf32>
    %30 = arith.addf %17, %29 : vector<8x128xf32>
    %c16_i32 = arith.constant 16 : i32
    %31 = arith.addi %7, %c16_i32 : i32
    %32 = tpu.assume_multiple %31, 8 : i32
    %33 = arith.index_cast %32 : i32 to index
    %c0_7 = arith.constant 0 : index
    %34 = vector.load %arg2[%33, %c0_7] : memref<128x2xf32, #tpu.memory_space<vmem>>, vector<8x1xf32>
    %35 = arith.index_cast %32 : i32 to index
    %c1_8 = arith.constant 1 : index
    %36 = vector.load %arg2[%35, %c1_8] : memref<128x2xf32, #tpu.memory_space<vmem>>, vector<8x1xf32>
    %37 = vector.broadcast %34 : vector<8x1xf32> to vector<8x128xf32>
    %38 = arith.cmpf oge, %37, %5 : vector<8x128xf32>
    %cst_9 = arith.constant 0.000000e+00 : f32
    %39 = vector.shape_cast %36 : vector<8x1xf32> to vector<8x1xf32>
    %40 = vector.broadcast %39 : vector<8x1xf32> to vector<8x128xf32>
    %41 = vector.broadcast %cst_9 : f32 to vector<8x128xf32>
    %42 = arith.select %38, %40, %41 : vector<8x128xi1>, vector<8x128xf32>
    %43 = arith.addf %30, %42 : vector<8x128xf32>
    %c24_i32 = arith.constant 24 : i32
    %44 = arith.addi %7, %c24_i32 : i32
    %45 = tpu.assume_multiple %44, 8 : i32
    %46 = arith.index_cast %45 : i32 to index
    %c0_10 = arith.constant 0 : index
    %47 = vector.load %arg2[%46, %c0_10] : memref<128x2xf32, #tpu.memory_space<vmem>>, vector<8x1xf32>
    %48 = arith.index_cast %45 : i32 to index
    %c1_11 = arith.constant 1 : index
    %49 = vector.load %arg2[%48, %c1_11] : memref<128x2xf32, #tpu.memory_space<vmem>>, vector<8x1xf32>
    %50 = vector.broadcast %47 : vector<8x1xf32> to vector<8x128xf32>
    %51 = arith.cmpf oge, %50, %5 : vector<8x128xf32>
    %cst_12 = arith.constant 0.000000e+00 : f32
    %52 = vector.shape_cast %49 : vector<8x1xf32> to vector<8x1xf32>
    %53 = vector.broadcast %52 : vector<8x1xf32> to vector<8x128xf32>
    %54 = vector.broadcast %cst_12 : f32 to vector<8x128xf32>
    %55 = arith.select %51, %53, %54 : vector<8x128xi1>, vector<8x128xf32>
    %56 = arith.addf %43, %55 : vector<8x128xf32>
    %c32_i32 = arith.constant 32 : i32
    %57 = arith.addi %7, %c32_i32 : i32
    %58 = tpu.assume_multiple %57, 8 : i32
    %59 = arith.index_cast %58 : i32 to index
    %c0_13 = arith.constant 0 : index
    %60 = vector.load %arg2[%59, %c0_13] : memref<128x2xf32, #tpu.memory_space<vmem>>, vector<8x1xf32>
    %61 = arith.index_cast %58 : i32 to index
    %c1_14 = arith.constant 1 : index
    %62 = vector.load %arg2[%61, %c1_14] : memref<128x2xf32, #tpu.memory_space<vmem>>, vector<8x1xf32>
    %63 = vector.broadcast %60 : vector<8x1xf32> to vector<8x128xf32>
    %64 = arith.cmpf oge, %63, %5 : vector<8x128xf32>
    %cst_15 = arith.constant 0.000000e+00 : f32
    %65 = vector.shape_cast %62 : vector<8x1xf32> to vector<8x1xf32>
    %66 = vector.broadcast %65 : vector<8x1xf32> to vector<8x128xf32>
    %67 = vector.broadcast %cst_15 : f32 to vector<8x128xf32>
    %68 = arith.select %64, %66, %67 : vector<8x128xi1>, vector<8x128xf32>
    %69 = arith.addf %56, %68 : vector<8x128xf32>
    %c40_i32 = arith.constant 40 : i32
    %70 = arith.addi %7, %c40_i32 : i32
    %71 = tpu.assume_multiple %70, 8 : i32
    %72 = arith.index_cast %71 : i32 to index
    %c0_16 = arith.constant 0 : index
    %73 = vector.load %arg2[%72, %c0_16] : memref<128x2xf32, #tpu.memory_space<vmem>>, vector<8x1xf32>
    %74 = arith.index_cast %71 : i32 to index
    %c1_17 = arith.constant 1 : index
    %75 = vector.load %arg2[%74, %c1_17] : memref<128x2xf32, #tpu.memory_space<vmem>>, vector<8x1xf32>
    %76 = vector.broadcast %73 : vector<8x1xf32> to vector<8x128xf32>
    %77 = arith.cmpf oge, %76, %5 : vector<8x128xf32>
    %cst_18 = arith.constant 0.000000e+00 : f32
    %78 = vector.shape_cast %75 : vector<8x1xf32> to vector<8x1xf32>
    %79 = vector.broadcast %78 : vector<8x1xf32> to vector<8x128xf32>
    %80 = vector.broadcast %cst_18 : f32 to vector<8x128xf32>
    %81 = arith.select %77, %79, %80 : vector<8x128xi1>, vector<8x128xf32>
    %82 = arith.addf %69, %81 : vector<8x128xf32>
    %c48_i32 = arith.constant 48 : i32
    %83 = arith.addi %7, %c48_i32 : i32
    %84 = tpu.assume_multiple %83, 8 : i32
    %85 = arith.index_cast %84 : i32 to index
    %c0_19 = arith.constant 0 : index
    %86 = vector.load %arg2[%85, %c0_19] : memref<128x2xf32, #tpu.memory_space<vmem>>, vector<8x1xf32>
    %87 = arith.index_cast %84 : i32 to index
    %c1_20 = arith.constant 1 : index
    %88 = vector.load %arg2[%87, %c1_20] : memref<128x2xf32, #tpu.memory_space<vmem>>, vector<8x1xf32>
    %89 = vector.broadcast %86 : vector<8x1xf32> to vector<8x128xf32>
    %90 = arith.cmpf oge, %89, %5 : vector<8x128xf32>
    %cst_21 = arith.constant 0.000000e+00 : f32
    %91 = vector.shape_cast %88 : vector<8x1xf32> to vector<8x1xf32>
    %92 = vector.broadcast %91 : vector<8x1xf32> to vector<8x128xf32>
    %93 = vector.broadcast %cst_21 : f32 to vector<8x128xf32>
    %94 = arith.select %90, %92, %93 : vector<8x128xi1>, vector<8x128xf32>
    %95 = arith.addf %82, %94 : vector<8x128xf32>
    %c56_i32 = arith.constant 56 : i32
    %96 = arith.addi %7, %c56_i32 : i32
    %97 = tpu.assume_multiple %96, 8 : i32
    %98 = arith.index_cast %97 : i32 to index
    %c0_22 = arith.constant 0 : index
    %99 = vector.load %arg2[%98, %c0_22] : memref<128x2xf32, #tpu.memory_space<vmem>>, vector<8x1xf32>
    %100 = arith.index_cast %97 : i32 to index
    %c1_23 = arith.constant 1 : index
    %101 = vector.load %arg2[%100, %c1_23] : memref<128x2xf32, #tpu.memory_space<vmem>>, vector<8x1xf32>
    %102 = vector.broadcast %99 : vector<8x1xf32> to vector<8x128xf32>
    %103 = arith.cmpf oge, %102, %5 : vector<8x128xf32>
    %cst_24 = arith.constant 0.000000e+00 : f32
    %104 = vector.shape_cast %101 : vector<8x1xf32> to vector<8x1xf32>
    %105 = vector.broadcast %104 : vector<8x1xf32> to vector<8x128xf32>
    %106 = vector.broadcast %cst_24 : f32 to vector<8x128xf32>
    %107 = arith.select %103, %105, %106 : vector<8x128xi1>, vector<8x128xf32>
    %108 = arith.addf %95, %107 : vector<8x128xf32>
    %c64_i32 = arith.constant 64 : i32
    %109 = arith.addi %7, %c64_i32 : i32
    %110 = tpu.assume_multiple %109, 8 : i32
    %111 = arith.index_cast %110 : i32 to index
    %c0_25 = arith.constant 0 : index
    %112 = vector.load %arg2[%111, %c0_25] : memref<128x2xf32, #tpu.memory_space<vmem>>, vector<8x1xf32>
    %113 = arith.index_cast %110 : i32 to index
    %c1_26 = arith.constant 1 : index
    %114 = vector.load %arg2[%113, %c1_26] : memref<128x2xf32, #tpu.memory_space<vmem>>, vector<8x1xf32>
    %115 = vector.broadcast %112 : vector<8x1xf32> to vector<8x128xf32>
    %116 = arith.cmpf oge, %115, %5 : vector<8x128xf32>
    %cst_27 = arith.constant 0.000000e+00 : f32
    %117 = vector.shape_cast %114 : vector<8x1xf32> to vector<8x1xf32>
    %118 = vector.broadcast %117 : vector<8x1xf32> to vector<8x128xf32>
    %119 = vector.broadcast %cst_27 : f32 to vector<8x128xf32>
    %120 = arith.select %116, %118, %119 : vector<8x128xi1>, vector<8x128xf32>
    %121 = arith.addf %108, %120 : vector<8x128xf32>
    %c72_i32 = arith.constant 72 : i32
    %122 = arith.addi %7, %c72_i32 : i32
    %123 = tpu.assume_multiple %122, 8 : i32
    %124 = arith.index_cast %123 : i32 to index
    %c0_28 = arith.constant 0 : index
    %125 = vector.load %arg2[%124, %c0_28] : memref<128x2xf32, #tpu.memory_space<vmem>>, vector<8x1xf32>
    %126 = arith.index_cast %123 : i32 to index
    %c1_29 = arith.constant 1 : index
    %127 = vector.load %arg2[%126, %c1_29] : memref<128x2xf32, #tpu.memory_space<vmem>>, vector<8x1xf32>
    %128 = vector.broadcast %125 : vector<8x1xf32> to vector<8x128xf32>
    %129 = arith.cmpf oge, %128, %5 : vector<8x128xf32>
    %cst_30 = arith.constant 0.000000e+00 : f32
    %130 = vector.shape_cast %127 : vector<8x1xf32> to vector<8x1xf32>
    %131 = vector.broadcast %130 : vector<8x1xf32> to vector<8x128xf32>
    %132 = vector.broadcast %cst_30 : f32 to vector<8x128xf32>
    %133 = arith.select %129, %131, %132 : vector<8x128xi1>, vector<8x128xf32>
    %134 = arith.addf %121, %133 : vector<8x128xf32>
    %c80_i32 = arith.constant 80 : i32
    %135 = arith.addi %7, %c80_i32 : i32
    %136 = tpu.assume_multiple %135, 8 : i32
    %137 = arith.index_cast %136 : i32 to index
    %c0_31 = arith.constant 0 : index
    %138 = vector.load %arg2[%137, %c0_31] : memref<128x2xf32, #tpu.memory_space<vmem>>, vector<8x1xf32>
    %139 = arith.index_cast %136 : i32 to index
    %c1_32 = arith.constant 1 : index
    %140 = vector.load %arg2[%139, %c1_32] : memref<128x2xf32, #tpu.memory_space<vmem>>, vector<8x1xf32>
    %141 = vector.broadcast %138 : vector<8x1xf32> to vector<8x128xf32>
    %142 = arith.cmpf oge, %141, %5 : vector<8x128xf32>
    %cst_33 = arith.constant 0.000000e+00 : f32
    %143 = vector.shape_cast %140 : vector<8x1xf32> to vector<8x1xf32>
    %144 = vector.broadcast %143 : vector<8x1xf32> to vector<8x128xf32>
    %145 = vector.broadcast %cst_33 : f32 to vector<8x128xf32>
    %146 = arith.select %142, %144, %145 : vector<8x128xi1>, vector<8x128xf32>
    %147 = arith.addf %134, %146 : vector<8x128xf32>
    %c88_i32 = arith.constant 88 : i32
    %148 = arith.addi %7, %c88_i32 : i32
    %149 = tpu.assume_multiple %148, 8 : i32
    %150 = arith.index_cast %149 : i32 to index
    %c0_34 = arith.constant 0 : index
    %151 = vector.load %arg2[%150, %c0_34] : memref<128x2xf32, #tpu.memory_space<vmem>>, vector<8x1xf32>
    %152 = arith.index_cast %149 : i32 to index
    %c1_35 = arith.constant 1 : index
    %153 = vector.load %arg2[%152, %c1_35] : memref<128x2xf32, #tpu.memory_space<vmem>>, vector<8x1xf32>
    %154 = vector.broadcast %151 : vector<8x1xf32> to vector<8x128xf32>
    %155 = arith.cmpf oge, %154, %5 : vector<8x128xf32>
    %cst_36 = arith.constant 0.000000e+00 : f32
    %156 = vector.shape_cast %153 : vector<8x1xf32> to vector<8x1xf32>
    %157 = vector.broadcast %156 : vector<8x1xf32> to vector<8x128xf32>
    %158 = vector.broadcast %cst_36 : f32 to vector<8x128xf32>
    %159 = arith.select %155, %157, %158 : vector<8x128xi1>, vector<8x128xf32>
    %160 = arith.addf %147, %159 : vector<8x128xf32>
    %c96_i32 = arith.constant 96 : i32
    %161 = arith.addi %7, %c96_i32 : i32
    %162 = tpu.assume_multiple %161, 8 : i32
    %163 = arith.index_cast %162 : i32 to index
    %c0_37 = arith.constant 0 : index
    %164 = vector.load %arg2[%163, %c0_37] : memref<128x2xf32, #tpu.memory_space<vmem>>, vector<8x1xf32>
    %165 = arith.index_cast %162 : i32 to index
    %c1_38 = arith.constant 1 : index
    %166 = vector.load %arg2[%165, %c1_38] : memref<128x2xf32, #tpu.memory_space<vmem>>, vector<8x1xf32>
    %167 = vector.broadcast %164 : vector<8x1xf32> to vector<8x128xf32>
    %168 = arith.cmpf oge, %167, %5 : vector<8x128xf32>
    %cst_39 = arith.constant 0.000000e+00 : f32
    %169 = vector.shape_cast %166 : vector<8x1xf32> to vector<8x1xf32>
    %170 = vector.broadcast %169 : vector<8x1xf32> to vector<8x128xf32>
    %171 = vector.broadcast %cst_39 : f32 to vector<8x128xf32>
    %172 = arith.select %168, %170, %171 : vector<8x128xi1>, vector<8x128xf32>
    %173 = arith.addf %160, %172 : vector<8x128xf32>
    %c104_i32 = arith.constant 104 : i32
    %174 = arith.addi %7, %c104_i32 : i32
    %175 = tpu.assume_multiple %174, 8 : i32
    %176 = arith.index_cast %175 : i32 to index
    %c0_40 = arith.constant 0 : index
    %177 = vector.load %arg2[%176, %c0_40] : memref<128x2xf32, #tpu.memory_space<vmem>>, vector<8x1xf32>
    %178 = arith.index_cast %175 : i32 to index
    %c1_41 = arith.constant 1 : index
    %179 = vector.load %arg2[%178, %c1_41] : memref<128x2xf32, #tpu.memory_space<vmem>>, vector<8x1xf32>
    %180 = vector.broadcast %177 : vector<8x1xf32> to vector<8x128xf32>
    %181 = arith.cmpf oge, %180, %5 : vector<8x128xf32>
    %cst_42 = arith.constant 0.000000e+00 : f32
    %182 = vector.shape_cast %179 : vector<8x1xf32> to vector<8x1xf32>
    %183 = vector.broadcast %182 : vector<8x1xf32> to vector<8x128xf32>
    %184 = vector.broadcast %cst_42 : f32 to vector<8x128xf32>
    %185 = arith.select %181, %183, %184 : vector<8x128xi1>, vector<8x128xf32>
    %186 = arith.addf %173, %185 : vector<8x128xf32>
    %c112_i32 = arith.constant 112 : i32
    %187 = arith.addi %7, %c112_i32 : i32
    %188 = tpu.assume_multiple %187, 8 : i32
    %189 = arith.index_cast %188 : i32 to index
    %c0_43 = arith.constant 0 : index
    %190 = vector.load %arg2[%189, %c0_43] : memref<128x2xf32, #tpu.memory_space<vmem>>, vector<8x1xf32>
    %191 = arith.index_cast %188 : i32 to index
    %c1_44 = arith.constant 1 : index
    %192 = vector.load %arg2[%191, %c1_44] : memref<128x2xf32, #tpu.memory_space<vmem>>, vector<8x1xf32>
    %193 = vector.broadcast %190 : vector<8x1xf32> to vector<8x128xf32>
    %194 = arith.cmpf oge, %193, %5 : vector<8x128xf32>
    %cst_45 = arith.constant 0.000000e+00 : f32
    %195 = vector.shape_cast %192 : vector<8x1xf32> to vector<8x1xf32>
    %196 = vector.broadcast %195 : vector<8x1xf32> to vector<8x128xf32>
    %197 = vector.broadcast %cst_45 : f32 to vector<8x128xf32>
    %198 = arith.select %194, %196, %197 : vector<8x128xi1>, vector<8x128xf32>
    %199 = arith.addf %186, %198 : vector<8x128xf32>
    %c120_i32 = arith.constant 120 : i32
    %200 = arith.addi %7, %c120_i32 : i32
    %201 = tpu.assume_multiple %200, 8 : i32
    %202 = arith.index_cast %201 : i32 to index
    %c0_46 = arith.constant 0 : index
    %203 = vector.load %arg2[%202, %c0_46] : memref<128x2xf32, #tpu.memory_space<vmem>>, vector<8x1xf32>
    %204 = arith.index_cast %201 : i32 to index
    %c1_47 = arith.constant 1 : index
    %205 = vector.load %arg2[%204, %c1_47] : memref<128x2xf32, #tpu.memory_space<vmem>>, vector<8x1xf32>
    %206 = vector.broadcast %203 : vector<8x1xf32> to vector<8x128xf32>
    %207 = arith.cmpf oge, %206, %5 : vector<8x128xf32>
    %cst_48 = arith.constant 0.000000e+00 : f32
    %208 = vector.shape_cast %205 : vector<8x1xf32> to vector<8x1xf32>
    %209 = vector.broadcast %208 : vector<8x1xf32> to vector<8x128xf32>
    %210 = vector.broadcast %cst_48 : f32 to vector<8x128xf32>
    %211 = arith.select %207, %209, %210 : vector<8x128xi1>, vector<8x128xf32>
    %212 = arith.addf %199, %211 : vector<8x128xf32>
    %c0_49 = arith.constant 0 : index
    %c0_50 = arith.constant 0 : index
    %213 = vector.load %arg5[%c0_49, %c0_50] : memref<8x128xf32, #tpu.memory_space<vmem>>, vector<8x128xf32>
    %214 = arith.addf %213, %212 : vector<8x128xf32>
    %c0_51 = arith.constant 0 : index
    %c0_52 = arith.constant 0 : index
    %215 = vector.load %arg5[%c0_51, %c0_52] : memref<8x128xf32, #tpu.memory_space<vmem>>, vector<8x128xf32>
    tpu.vector_store %arg5[%c0_51, %c0_52], %214 {strides = array<i32>} : memref<8x128xf32, #tpu.memory_space<vmem>>, vector<8x128xf32>,
    %c1_i32 = arith.constant 1 : i32
    %c0_i32_53 = arith.constant 0 : i32
    %216 = arith.cmpi eq, %arg1, %c0_i32_53 : i32
    %217 = arith.extui %216 : i1 to i32
    %c0_i32_54 = arith.constant 0 : i32
    %218 = arith.cmpi ne, %217, %c0_i32_54 : i32
    scf.if %218 {
      %c0_55 = arith.constant 0 : index
      %c0_56 = arith.constant 0 : index
      %219 = vector.load %arg5[%c0_55, %c0_56] : memref<8x128xf32, #tpu.memory_space<vmem>>, vector<8x128xf32>
      %cst_57 = arith.constant dense<0.000000e+00> : vector<128xf32>
      %220 = vector.multi_reduction <add>, %219, %cst_57 [0] : vector<8x128xf32> to vector<128xf32>
      %221 = vector.shape_cast %220 : vector<128xf32> to vector<1x128xf32>
      %c1_58 = arith.constant 1 : index
      %c0_59 = arith.constant 0 : index
      %222 = vector.load %arg3[%c1_58, %c0_59] : memref<3x128xf32, #tpu.memory_space<vmem>>, vector<1x128xf32>
      %c2 = arith.constant 2 : index
      %c0_60 = arith.constant 0 : index
      %223 = vector.load %arg3[%c2, %c0_60] : memref<3x128xf32, #tpu.memory_space<vmem>>, vector<1x128xf32>
      %224 = math.log %221 : vector<1x128xf32>
      %225 = arith.subf %222, %224 : vector<1x128xf32>
      %226 = arith.mulf %225, %223 : vector<1x128xf32>
      %c0_61 = arith.constant 0 : index
      %c0_62 = arith.constant 0 : index
      %227 = vector.load %arg4[%c0_61, %c0_62] : memref<1x128xf32, #tpu.memory_space<vmem>>, vector<1x128xf32>
      tpu.vector_store %arg4[%c0_61, %c0_62], %226 {strides = array<i32>} : memref<1x128xf32, #tpu.memory_space<vmem>>, vector<1x128xf32>,
    } else {
    }
    return
  }
  func.func @transform_0(%arg0: i32, %arg1: i32) -> (i32, i32) {
    %c0_i32 = arith.constant 0 : i32
    %c0_i32_0 = arith.constant 0 : i32
    return %arg1, %c0_i32 : i32, i32
  }
  func.func @transform_1(%arg0: i32, %arg1: i32) -> (i32, i32) {
    %c0_i32 = arith.constant 0 : i32
    %c0_i32_0 = arith.constant 0 : i32
    return %c0_i32, %arg0 : i32, i32
  }
  func.func @transform_2(%arg0: i32, %arg1: i32) -> (i32, i32) {
    %c0_i32 = arith.constant 0 : i32
    %c0_i32_0 = arith.constant 0 : i32
    return %c0_i32, %arg0 : i32, i32
  }
}

</mosaic_0001>

<bundles_post_ra>
// kernel: tpu_custom_call.1
= control target key start
LH: loop header
LB: loop body
LE: loop exit
PB: predicated region body
PF: predicated region fallthrough
CT: control target
= control target key end

     0   :  { %v354_v1 = vmov 1   ;;  %v355_v2 = vmov 0   ;;  %s450_s0 = inlined_call_operand.vmem [shape: f32[128,2], index: 0, kind: input, shape index: {}]   ;;  %s451_s1 = inlined_call_operand.vmem [shape: f32[3,128], index: 1, kind: input, shape index: {}]   ;;  %s452_s2 = inlined_call_operand.hbm [shape: f32[1,128], index: 2, kind: output, shape index: {}]  }
   0x1   :  { %v22_v0 = vld [vmem:[%s450_s0] sm:$0xff]  ;;  %328 = vset.pattern.permute.xlu1 %v354_v1  ;;  %327 = vset.pattern.permute.xlu0 %v355_v2  ;;  %v309_v3 = vld [vmem:[%s450_s0 + $0x8] sm:$0xff] }
   0x2   :  { %30 = vperm.xlu1 %328, %v22_v0   ;;  %25 = vperm.xlu0 %327, %v22_v0  }
   0x3   :  { %7 = vsyncpa [#allocation4], 0  ;;  %v310_v4 = vld [vmem:[%s450_s0 + $0x10] sm:$0xff]  ;;  %v311_v5 = vld [vmem:[%s450_s0 + $0x18] sm:$0xff]  ;;  %s356_s18 = smov [#allocation3]  }
   0x4   :  { %v312_v6 = vld [vmem:[%s450_s0 + $0x20] sm:$0xff]  ;;  %v313_v7 = vld [vmem:[%s450_s0 + $0x28] sm:$0xff]  ;;  %v314_v8 = vld [vmem:[%s450_s0 + $0x30] sm:$0xff]  ;;  %s285_s19 = sshll.u32 %s356_s18, 4  ;;  %s286_s19 = int_to_ptr.vmem [resolvable:$true] %s285_s19 }
   0x5   :  { %v315_v9 = vld [vmem:[%s450_s0 + $0x38] sm:$0xff]  ;;  %v316_v10 = vld [vmem:[%s450_s0 + $0x40] sm:$0xff]  ;;  %v317_v11 = vld [vmem:[%s450_s0 + $0x48] sm:$0xff]  ;;  %s332_s20 = scalar_lea.vmem %s286_s19, 16  ;;  %s336_s21 = scalar_lea.vmem %s286_s19, 32 }
   0x6   :  { %44 = vperm.xlu1 %328, %v309_v3   ;;  %39 = vperm.xlu0 %327, %v309_v3   ;;  %v318_v12 = vld [vmem:[%s450_s0 + $0x50] sm:$0xff]  ;;  %v319_v13 = vld [vmem:[%s450_s0 + $0x58] sm:$0xff]  ;;  %v320_v14 = vld [vmem:[%s450_s0 + $0x60] sm:$0xff]  ;;  %p333_p0 = scmp.ne.s32.totalorder %s286_s19, %s332_s20  ;;  %p337_p1 = scmp.lt.s32.totalorder %s286_s19, %s286_s19 }
   0x7   :  { %v321_v15 = vld [vmem:[%s450_s0 + $0x68] sm:$0xff]  ;;  %v322_v16 = vld [vmem:[%s450_s0 + $0x70] sm:$0xff]  ;;  %v323_v17 = vld [vmem:[%s450_s0 + $0x78] sm:$0xff]  ;;  %p338_p2 = scmp.lt.s32.totalorder %s336_s21, %s332_s20 }
   0x8   :  { %v423_v32 = vld [vmem:[%s451_s1] ss:$0 sm:$0xff] }
   0x9   :  { %p339_p3 = por %p338_p2, %p337_p1 }
   0xa   :  { %59 = vperm.xlu1 %328, %v310_v4   ;;  %54 = vperm.xlu0 %327, %v310_v4  }
   0xb   :  { %p340_p4 = pnand %p339_p3, %p333_p0 }
   0xe   :  { %74 = vperm.xlu1 %328, %v311_v5   ;;  %69 = vperm.xlu0 %327, %v311_v5  }
  0x12   :  { %89 = vperm.xlu1 %328, %v312_v6   ;;  %84 = vperm.xlu0 %327, %v312_v6  }
  0x16   :  { %104 = vperm.xlu1 %328, %v313_v7   ;;  %99 = vperm.xlu0 %327, %v313_v7  }
  0x1a   :  { %119 = vperm.xlu1 %328, %v314_v8   ;;  %114 = vperm.xlu0 %327, %v314_v8  }
  0x1e   :  { %134 = vperm.xlu1 %328, %v315_v9   ;;  %129 = vperm.xlu0 %327, %v315_v9  }
  0x22   :  { %149 = vperm.xlu1 %328, %v316_v10   ;;  %144 = vperm.xlu0 %327, %v316_v10  }
  0x26   :  { %164 = vperm.xlu1 %328, %v317_v11   ;;  %159 = vperm.xlu0 %327, %v317_v11  }
  0x2a   :  { %179 = vperm.xlu1 %328, %v318_v12   ;;  %174 = vperm.xlu0 %327, %v318_v12  }
  0x2e   :  { %194 = vperm.xlu1 %328, %v319_v13   ;;  %189 = vperm.xlu0 %327, %v319_v13  }
  0x32   :  { %209 = vperm.xlu1 %328, %v320_v14   ;;  %204 = vperm.xlu0 %327, %v320_v14  }
  0x36   :  { %224 = vperm.xlu1 %328, %v321_v15   ;;  %219 = vperm.xlu0 %327, %v321_v15  }
  0x3a   :  { %239 = vperm.xlu1 %328, %v322_v16   ;;  %234 = vperm.xlu0 %327, %v322_v16  }
  0x3e   :  { %254 = vperm.xlu1 %328, %v323_v17   ;;  %249 = vperm.xlu0 %327, %v323_v17  }
  0x42   :  { %329 = vset.pattern.permute.xlu0 %v354_v1 }
  0x7d   :  { %v31_v18 = vpop.permute.xlu1 %30  ;;  %v26_v19 = vpop.permute.xlu0 %25 }
  0x7e   :  { %vm28_vm1 = vcmp.ge.f32.partialorder %v26_v19, %v423_v32 }
  0x7f   :  { %v33_v38 = vsel %vm28_vm1, %v31_v18, 0.0 }
  0x81   :  { %v45_v20 = vpop.permute.xlu1 %44  ;;  %v40_v21 = vpop.permute.xlu0 %39 }
  0x82   :  { %vm42_vm0 = vcmp.ge.f32.partialorder %v40_v21, %v423_v32 }
  0x83   :  { %v47_v35 = vsel %vm42_vm0, %v45_v20, 0.0 }
  0x84   :  { %v48_v40 = vadd.f32 %v47_v35, %v33_v38 }
  0x85   :  { %v60_v22 = vpop.permute.xlu1 %59  ;;  %v55_v23 = vpop.permute.xlu0 %54 }
  0x86   :  { %vm57_vm2 = vcmp.ge.f32.partialorder %v55_v23, %v423_v32 }
  0x87   :  { %v62_v39 = vsel %vm57_vm2, %v60_v22, 0.0 }
  0x88   :  { %v63_v44 = vadd.f32 %v62_v39, %v48_v40 }
  0x89   :  { %v75_v24 = vpop.permute.xlu1 %74  ;;  %v70_v25 = vpop.permute.xlu0 %69 }
  0x8a   :  { %vm72_vm3 = vcmp.ge.f32.partialorder %v70_v25, %v423_v32  ;;  %v272_v25 = vld [vmem:[%s451_s1 + $0x1] sm:$0x1] }
  0x8b   :  { %v77_v41 = vsel %vm72_vm3, %v75_v24, 0.0 }
  0x8c   :  { %v78_v46 = vadd.f32 %v77_v41, %v63_v44 }
  0x8d   :  { %v90_v26 = vpop.permute.xlu1 %89  ;;  %v85_v27 = vpop.permute.xlu0 %84 }
  0x8e   :  { %vm87_vm4 = vcmp.ge.f32.partialorder %v85_v27, %v423_v32  ;;  %v273_v27 = vld [vmem:[%s451_s1 + $0x2] sm:$0x1] }
  0x8f   :  { %v92_v45 = vsel %vm87_vm4, %v90_v26, 0.0 }
  0x90   :  { %v93_v50 = vadd.f32 %v92_v45, %v78_v46 }
  0x91   :  { %v105_v28 = vpop.permute.xlu1 %104  ;;  %v100_v29 = vpop.permute.xlu0 %99 }
  0x92   :  { %vm102_vm5 = vcmp.ge.f32.partialorder %v100_v29, %v423_v32 }
  0x93   :  { %v107_v47 = vsel %vm102_vm5, %v105_v28, 0.0 }
  0x94   :  { %v108_v52 = vadd.f32 %v107_v47, %v93_v50 }
  0x95   :  { %v120_v30 = vpop.permute.xlu1 %119  ;;  %v115_v31 = vpop.permute.xlu0 %114 }
  0x96   :  { %vm117_vm6 = vcmp.ge.f32.partialorder %v115_v31, %v423_v32 }
  0x97   :  { %v122_v51 = vsel %vm117_vm6, %v120_v30, 0.0 }
  0x98   :  { %v123_v56 = vadd.f32 %v122_v51, %v108_v52 }
  0x99   :  { %v135_v33 = vpop.permute.xlu1 %134  ;;  %v130_v34 = vpop.permute.xlu0 %129 }
  0x9a   :  { %vm132_vm7 = vcmp.ge.f32.partialorder %v130_v34, %v423_v32 }
  0x9b   :  { %v137_v53 = vsel %vm132_vm7, %v135_v33, 0.0 }
  0x9c   :  { %v138_v58 = vadd.f32 %v137_v53, %v123_v56 }
  0x9d   :  { %v150_v36 = vpop.permute.xlu1 %149  ;;  %v145_v37 = vpop.permute.xlu0 %144 }
  0x9e   :  { %vm147_vm8 = vcmp.ge.f32.partialorder %v145_v37, %v423_v32 }
  0x9f   :  { %v152_v57 = vsel %vm147_vm8, %v150_v36, 0.0 }
  0xa0   :  { %v153_v62 = vadd.f32 %v152_v57, %v138_v58 }
  0xa1   :  { %v165_v42 = vpop.permute.xlu1 %164  ;;  %v160_v43 = vpop.permute.xlu0 %159 }
  0xa2   :  { %vm162_vm9 = vcmp.ge.f32.partialorder %v160_v43, %v423_v32 }
  0xa3   :  { %v167_v59 = vsel %vm162_vm9, %v165_v42, 0.0 }
  0xa4   :  { %v168_v0 = vadd.f32 %v167_v59, %v153_v62 }
  0xa5   :  { %v180_v48 = vpop.permute.xlu1 %179  ;;  %v175_v49 = vpop.permute.xlu0 %174 }
  0xa6   :  { %vm177_vm10 = vcmp.ge.f32.partialorder %v175_v49, %v423_v32 }
  0xa7   :  { %v182_v63 = vsel %vm177_vm10, %v180_v48, 0.0 }
  0xa8   :  { %v183_v4 = vadd.f32 %v182_v63, %v168_v0 }
  0xa9   :  { %v195_v54 = vpop.permute.xlu1 %194  ;;  %v190_v55 = vpop.permute.xlu0 %189 }
  0xaa   :  { %vm192_vm11 = vcmp.ge.f32.partialorder %v190_v55, %v423_v32 }
  0xab   :  { %v197_v1 = vsel %vm192_vm11, %v195_v54, 0.0 }
  0xac   :  { %v198_v6 = vadd.f32 %v197_v1, %v183_v4 }
  0xad   :  { %v210_v60 = vpop.permute.xlu1 %209  ;;  %v205_v61 = vpop.permute.xlu0 %204 }
  0xae   :  { %vm207_vm12 = vcmp.ge.f32.partialorder %v205_v61, %v423_v32 }
  0xaf   :  { %v212_v5 = vsel %vm207_vm12, %v210_v60, 0.0 }
  0xb0   :  { %v213_v10 = vadd.f32 %v212_v5, %v198_v6 }
  0xb1   :  { %v225_v2 = vpop.permute.xlu1 %224  ;;  %v220_v3 = vpop.permute.xlu0 %219 }
  0xb2   :  { %vm222_vm13 = vcmp.ge.f32.partialorder %v220_v3, %v423_v32 }
  0xb3   :  { %v227_v7 = vsel %vm222_vm13, %v225_v2, 0.0 }
  0xb4   :  { %v228_v12 = vadd.f32 %v227_v7, %v213_v10 }
  0xb5   :  { %v240_v8 = vpop.permute.xlu1 %239  ;;  %v235_v9 = vpop.permute.xlu0 %234 }
  0xb6   :  { %vm237_vm14 = vcmp.ge.f32.partialorder %v235_v9, %v423_v32 }
  0xb7   :  { %v242_v11 = vsel %vm237_vm14, %v240_v8, 0.0 }
  0xb8   :  { %v243_v15 = vadd.f32 %v242_v11, %v228_v12 }
  0xb9   :  { %v255_v13 = vpop.permute.xlu1 %254  ;;  %v250_v14 = vpop.permute.xlu0 %249 }
  0xba   :  { %vm252_vm15 = vcmp.ge.f32.partialorder %v250_v14, %v423_v32 }
  0xbb   :  { %v257_v16 = vsel %vm252_vm15, %v255_v13, 0.0 }
  0xbc   :  { %v258_v17 = vadd.f32 %v257_v16, %v243_v15 }
  0xbe   :  { %v266_v18 = vrot.slane %v258_v17, 4 }
  0xc0   :  { %v267_v19 = vadd.f32 %v266_v18, %v258_v17 }
  0xc2   :  { %v268_v20 = vrot.slane %v267_v19, 2 }
  0xc4   :  { %v269_v21 = vadd.f32 %v268_v20, %v267_v19 }
  0xc6   :  { %v270_v22 = vrot.slane %v269_v21, 1 }
  0xc8   :  { %v271_v23 = vadd.f32 %v270_v22, %v269_v21 }
  0xca   :  { %330 = vlog2.f32 %v271_v23 }
  0xd7   :  { %v331_v24 = vpop.eup %330 }
  0xd8   :  { %v275_v26 = vmul.f32 0.6931472, %v331_v24 }
  0xda   :  { %v276_v28 = vsub.f32 %v272_v25, %v275_v26 }
  0xdc   :  { %v277_v29 = vmul.f32 %v276_v28, %v273_v27 }
  0xde   :  { %278 = vst [vmem:[#allocation3] sm:$0x1] %v277_v29 }
  0xdf   :  { %343 = shalt.err (!%p340_p4)
}
  0xe0   :  { %288 = dma.vmem_to_hbm [thread:$0]  %s286_s19, 16, %s452_s2, [#allocation4]  }
  0xe1   :  { %352 = dma.done.wait [#allocation4], 16  }
  0xe2   :  { %353 = vsyncadd [#allocation4], 4294967280 }
  0xe3   :  { %292 = vsyncpa [#allocation4], 1 }

</bundles_post_ra>
